<compile_context>
chip_gen: v7x
topology: tpu7x:2x2x1
jax: 0.10.0
libtpu: 0.0.40
codegen_flags: <defaults>
</compile_context>

<pallas_src>
import math
import functools

import jax
import jax.numpy as jnp
from jax import lax
from jax.experimental import pallas as pl
from jax.experimental.pallas import tpu as pltpu


# --------------------------------------------------------------------------- kernel

def _sdpa_kernel(*refs, scale, fill, s_valid, s_kpad, has_mask, emit_w):
    """One grid step: G heads x TQ query rows against all (padded) keys.

    refs: q (G,TQ,D), k (G,S_k,D), v (G,S_k,D) [, mask (1|G,TQ,S_k) int8]
          -> o (G,TQ,D) [, w (G,TQ,S_k)]
    """
    if has_mask:
        q_ref, k_ref, v_ref, m_ref = refs[:4]
        out_refs = refs[4:]
    else:
        q_ref, k_ref, v_ref = refs[:3]
        m_ref = None
        out_refs = refs[3:]
    if emit_w:
        o_ref, w_ref = out_refs
    else:
        (o_ref,) = out_refs
        w_ref = None

    q = q_ref[...]
    # Fold 1/sqrt(d_k) into Q: S*D multiplies instead of S*S.  (Tiny extra bf16
    # rounding vs. torch, which scales the f32 scores; within tolerances.)
    q = q * jnp.asarray(scale, dtype=q.dtype)
    # MXU matmul in the input dtype, f32 accumulation.
    scores = jnp.einsum("gqd,gkd->gqk", q, k_ref[...],
                        preferred_element_type=jnp.float32)

    if has_mask:
        # Additive bias built once on the (head-shared) mask block, then one add
        # over (G,TQ,S_k) -- no cast/compare/select over the full score block.
        # (User mask is zero-padded over padded key columns, so it covers them too.)
        bias = jnp.where(m_ref[...] != 0, 0.0, fill).astype(jnp.float32)
        scores = scores + bias
    elif s_kpad > s_valid:
        # No user mask but lane-padded keys: mask padded columns with an iota bias.
        col = lax.broadcasted_iota(jnp.int32, (1, s_kpad), 1)
        pad_bias = jnp.where(col < s_valid, 0.0, fill).astype(jnp.float32)
        scores = scores + pad_bias.reshape(1, 1, s_kpad)

    m = jnp.max(scores, axis=-1, keepdims=True)
    e = jnp.exp(scores - m)
    denom = jnp.sum(e, axis=-1, keepdims=True)

    w_dtype = w_ref.dtype if emit_w else o_ref.dtype
    # approx reciprocal rides the (otherwise idle) EUP slot; its ~2^-12 error is
    # below bf16 resolution, so only use it when the consumer dtype is bf16.
    approx = jnp.dtype(w_dtype) == jnp.dtype(jnp.bfloat16)
    attn = e * pl.reciprocal(denom, approx=approx)

    # Single downcast of the weights; reuse it for the PV matmul when dtypes match.
    if emit_w:
        attn_lo = attn.astype(w_ref.dtype)
        attn_v = attn_lo if w_ref.dtype == v_ref.dtype else attn.astype(v_ref.dtype)
    else:
        attn_lo = None
        attn_v = attn.astype(v_ref.dtype)

    out = jnp.einsum("gqk,gkd->gqd", attn_v, v_ref[...],
                     preferred_element_type=jnp.float32)
    o_ref[...] = out.astype(o_ref.dtype)
    if emit_w:
        w_ref[...] = attn_lo


# --------------------------------------------------------------------- tile selection

def _round_up(x, m):
    return ((x + m - 1) // m) * m


def _divisors_desc(n):
    return [d for d in range(n, 0, -1) if n % d == 0]


def _vmem_budget():
    """Generation-aware soft budget for pipelined blocks + f32 temporaries."""
    try:
        cap = pltpu.get_tpu_info().vmem_capacity_bytes
    except Exception:
        cap = 64 * 1024 * 1024          # unknown part: assume the smallest (v7x)
    if cap >= 128 * 1024 * 1024:        # v5e / v6e: 128 MiB physical VMEM
        return 96 * 1024 * 1024, 112 * 1024 * 1024
    return 30 * 1024 * 1024, 46 * 1024 * 1024   # v7x: 64 MiB physical VMEM


def _step_vmem_bytes(G, TQ, S_k, D, in_b, out_b, w_b, has_mask, mask_shared, emit_w):
    qo = G * TQ * D * (in_b + out_b)
    kv = 2 * G * S_k * D * in_b
    w = G * TQ * S_k * w_b if emit_w else 0
    msk = ((1 if mask_shared else G) * TQ * S_k) if has_mask else 0   # int8
    pipelined = 2 * (qo + kv + w + msk)            # double-buffered blocks
    temps = 4 * G * TQ * S_k * 4                   # scores / exp / attn / bias (f32)
    return pipelined + temps


def _choose_tiles(B, H, S, S_k, D, in_b, out_b, w_b, has_mask, mask_shared, emit_w,
                  budget):
    """Pick (G heads per step, TQ query rows per step): largest TQ first, then G.

    Falls back to smaller TQ (query axis gets zero-padded) when even G=1 exceeds
    the budget, instead of giving up -- important for v7x's 64 MiB VMEM.
    """
    BH = B * H
    tq_candidates = [S] + [t for t in (1024, 512, 256, 128, 64, 32, 16, 8) if t < S]
    G, TQ = 1, tq_candidates[-1]        # last-resort fallback (may spill)
    done = False
    for tq in tq_candidates:
        for g in _divisors_desc(H):
            if _step_vmem_bytes(g, tq, S_k, D, in_b, out_b, w_b,
                                has_mask, mask_shared, emit_w) <= budget:
                G, TQ = g, tq
                done = True
                break
        if done:
            break
    # Keep >= 2 steps along the head-group axis so v7x megacore can split axis 0
    # while K/V blocks stay resident across the query-tile axis on each core.
    while G > 1 and BH // G < 2:
        G = [d for d in _divisors_desc(H) if d < G][0]
    return G, TQ


# ---------------------------------------------------------------------------- wrapper

def scaled_dot_product_attention(query, key, value, mask=None, return_weights=True):
    """Pallas TPU implementation of ScaledDotProductAttention.forward.

    query, key, value: [B, H, S, D]; mask: None or broadcastable to [B, H, S, S]
    (positions where mask == 0 are filled with finfo.min before softmax).
    Returns (output [B, H, S, D], attn_weights [B, H, S, S]) in query.dtype, or just
    the output when return_weights=False (skips the S^2 weight writeback entirely).
    """
    B, H, S, D = query.shape
    BH = B * H
    out_dtype = query.dtype
    w_dtype = query.dtype          # matches torch: softmax keeps the scores dtype
    in_b = jnp.dtype(query.dtype).itemsize
    out_b = jnp.dtype(out_dtype).itemsize
    w_b = jnp.dtype(w_dtype).itemsize
    scale = 1.0 / math.sqrt(D)
    # TODO(synk): torch would use bf16 finfo.min for bf16 scores; f32 min behaves the same.
    fill = float(jnp.finfo(jnp.float32).min)

    # Lane-pad the key/score axis to a multiple of 128 when the overhead is modest
    # (< ~30%): lane-dense stores on the S^2 weight output and full MXU N tiles.
    S_k = _round_up(S, 128)
    if S_k != S and S_k > (3 * S) // 2:
        S_k = S                    # padding overhead too large (tiny S): keep full-extent blocks
    pad_k = S_k - S

    has_mask = mask is not None
    if has_mask:
        m4 = jnp.asarray(mask)
        while m4.ndim < 4:
            m4 = m4[None]
        mask_shared = (m4.shape[1] == 1)
    else:
        mask_shared = True

    budget, vmem_limit = _vmem_budget()
    G, TQ = _choose_tiles(B, H, S, S_k, D, in_b, out_b, w_b,
                          has_mask, mask_shared, return_weights, budget)

    # Query-axis padding only when the query axis is actually tiled.
    if TQ < S:
        S_q = _round_up(S, TQ)
    else:
        TQ = S
        S_q = S
    pad_q = S_q - S

    q = query.reshape(BH, S, D)
    k = key.reshape(BH, S, D)
    v = value.reshape(BH, S, D)
    if pad_q:
        q = jnp.pad(q, ((0, 0), (0, pad_q), (0, 0)))
    if pad_k:
        k = jnp.pad(k, ((0, 0), (0, pad_k), (0, 0)))
        v = jnp.pad(v, ((0, 0), (0, pad_k), (0, 0)))

    mask_arr = None
    if has_mask:
        if mask_shared:
            m3 = jnp.broadcast_to(m4, (B, 1, S, S)).reshape(B, S, S)
        else:
            m3 = jnp.broadcast_to(m4, (B, H, S, S)).reshape(BH, S, S)
        m3 = (m3 != 0).astype(jnp.int8)       # 1 = keep, 0 = masked out
        if pad_q:
            m3 = jnp.pad(m3, ((0, 0), (0, pad_q), (0, 0)), constant_values=1)
        if pad_k:
            m3 = jnp.pad(m3, ((0, 0), (0, 0), (0, pad_k)), constant_values=0)
        mask_arr = m3

    grid = (BH // G, S_q // TQ)

    q_spec = pl.BlockSpec((G, TQ, D), lambda i, qi: (i, qi, 0))
    kv_spec = pl.BlockSpec((G, S_k, D), lambda i, qi: (i, 0, 0))   # resident across qi
    o_spec = pl.BlockSpec((G, TQ, D), lambda i, qi: (i, qi, 0))

    in_specs = [q_spec, kv_spec, kv_spec]
    operands = [q, k, v]
    if has_mask:
        if mask_shared:
            # reuse the same (1, TQ, S_k) mask block for every head of a batch
            m_spec = pl.BlockSpec((1, TQ, S_k), lambda i, qi: ((i * G) // H, qi, 0))
        else:
            m_spec = pl.BlockSpec((G, TQ, S_k), lambda i, qi: (i, qi, 0))
        in_specs.append(m_spec)
        operands.append(mask_arr)

    kernel = functools.partial(_sdpa_kernel, scale=scale, fill=fill,
                               s_valid=S, s_kpad=S_k,
                               has_mask=has_mask, emit_w=return_weights)

    cparams = pltpu.CompilerParams(
        # Megacore (v7x) splits the head-group axis; qi stays serial per core so
        # K/V blocks (index_map ignores qi) are fetched once per head group per core.
        dimension_semantics=("parallel", "arbitrary"),
        vmem_limit_bytes=vmem_limit,
    )

    if return_weights:
        out_shapes = (jax.ShapeDtypeStruct((BH, S_q, D), out_dtype),
                      jax.ShapeDtypeStruct((BH, S_q, S_k), w_dtype))
        w_spec = pl.BlockSpec((G, TQ, S_k), lambda i, qi: (i, qi, 0))
        out, attn = pl.pallas_call(
            kernel, out_shape=out_shapes, grid=grid,
            in_specs=in_specs, out_specs=(o_spec, w_spec),
            compiler_params=cparams,
        )(*operands)
        out = out[:, :S, :].reshape(B, H, S, D)
        attn = attn[:, :S, :S].reshape(B, H, S, S)
        return out, attn

    out_shape = jax.ShapeDtypeStruct((BH, S_q, D), out_dtype)
    out = pl.pallas_call(
        kernel, out_shape=out_shape, grid=grid,
        in_specs=in_specs, out_specs=o_spec,
        compiler_params=cparams,
    )(*operands)
    return out[:, :S, :].reshape(B, H, S, D)


# -------------------------------------------------------------------------- reference

def _reference(query, key, value, mask=None):
    d_k = query.shape[-1]
    scores = jnp.einsum("bhqd,bhkd->bhqk", query, key) / math.sqrt(d_k)
    if mask is not None:
        scores = jnp.where(mask == 0, jnp.finfo(scores.dtype).min, scores)
    w = jax.nn.softmax(scores, axis=-1)
    out = jnp.einsum("bhqk,bhkd->bhqd", w, value)
    return out, w


if __name__ == "__main__":
    key0 = jax.random.PRNGKey(0)
    B, H, S, D = 2, 4, 8, 32
    kq, kk, kv, km, km2, kp = jax.random.split(key0, 6)
    query = jax.random.normal(kq, (B, H, S, D), dtype=jnp.float32)
    key_ = jax.random.normal(kk, (B, H, S, D), dtype=jnp.float32)
    value = jax.random.normal(kv, (B, H, S, D), dtype=jnp.float32)
    # masks (1 = keep, 0 = mask out): head-shared and per-head variants
    msk_shared = (jax.random.uniform(km, (B, 1, S, S)) > 0.2).astype(jnp.int32)
    msk_perhead = (jax.random.uniform(km2, (B, H, S, S)) > 0.3).astype(jnp.int32)

    # 1) no-mask path
    out0, w0 = scaled_dot_product_attention(query, key_, value, mask=None)
    jax.block_until_ready((out0, w0))
    ro0, rw0 = _reference(query, key_, value, None)
    assert jnp.allclose(out0, ro0, atol=1e-4, rtol=1e-4)
    assert jnp.allclose(w0, rw0, atol=1e-5, rtol=1e-4)

    # 2) head-shared mask path (mask block reused across heads)
    out1, w1 = scaled_dot_product_attention(query, key_, value, mask=msk_shared)
    jax.block_until_ready((out1, w1))
    ro1, rw1 = _reference(query, key_, value, msk_shared)
    assert jnp.allclose(out1, ro1, atol=1e-4, rtol=1e-4)
    assert jnp.allclose(w1, rw1, atol=1e-5, rtol=1e-4)

    # 3) per-head mask path
    out2, w2 = scaled_dot_product_attention(query, key_, value, mask=msk_perhead)
    jax.block_until_ready((out2, w2))
    ro2, rw2 = _reference(query, key_, value, msk_perhead)
    assert jnp.allclose(out2, ro2, atol=1e-4, rtol=1e-4)
    assert jnp.allclose(w2, rw2, atol=1e-5, rtol=1e-4)

    # 4) weights skipped (drops the S^2 HBM writeback entirely)
    out_nw = scaled_dot_product_attention(query, key_, value, return_weights=False)
    jax.block_until_ready(out_nw)
    assert jnp.allclose(out_nw, ro0, atol=1e-4, rtol=1e-4)

    # 5) bf16 smoke test (MXU-native inputs, f32 accumulation inside the kernel)
    qb, kb, vb = (x.astype(jnp.bfloat16) for x in (query, key_, value))
    out3, w3 = scaled_dot_product_attention(qb, kb, vb, mask=msk_shared)
    jax.block_until_ready((out3, w3))
    ro3, rw3 = _reference(qb.astype(jnp.float32), kb.astype(jnp.float32),
                          vb.astype(jnp.float32), msk_shared)
    assert jnp.allclose(out3.astype(jnp.float32), ro3, atol=1e-1, rtol=1e-1)
    assert jnp.allclose(w3.astype(jnp.float32), rw3, atol=1e-1, rtol=1e-1)

    # 6) non-multiple-of-128 sequence -> exercises key-axis lane padding + slice-back
    Bp, Hp, Sp, Dp = 1, 2, 200, 32
    qp = jax.random.normal(kp, (Bp, Hp, Sp, Dp), dtype=jnp.float32)
    kpd = jax.random.normal(jax.random.fold_in(kp, 1), (Bp, Hp, Sp, Dp), dtype=jnp.float32)
    vpd = jax.random.normal(jax.random.fold_in(kp, 2), (Bp, Hp, Sp, Dp), dtype=jnp.float32)
    mpd = (jax.random.uniform(jax.random.fold_in(kp, 3), (Bp, 1, Sp, Sp)) > 0.2).astype(jnp.int32)
    out4, w4 = scaled_dot_product_attention(qp, kpd, vpd, mask=mpd)
    jax.block_until_ready((out4, w4))
    ro4, rw4 = _reference(qp, kpd, vpd, mpd)
    assert jnp.allclose(out4, ro4, atol=1e-4, rtol=1e-4)
    assert jnp.allclose(w4, rw4, atol=1e-5, rtol=1e-4)

    print("KERNEL_OK")
</pallas_src>

<mosaic_0001>
module attributes {stable_mosaic.version = 11 : i64} {
  func.func @_sdpa_kernel(%arg0: i32, %arg1: i32, %arg2: memref<4x8x32xf32, #tpu.memory_space<vmem>>, %arg3: memref<4x8x32xf32, #tpu.memory_space<vmem>>, %arg4: memref<4x8x32xf32, #tpu.memory_space<vmem>>, %arg5: memref<4x8x32xf32, #tpu.memory_space<vmem>>, %arg6: memref<4x8x8xf32, #tpu.memory_space<vmem>>) attributes {dimension_semantics = [#tpu.dimension_semantics<parallel>, #tpu.dimension_semantics<arbitrary>], iteration_bounds = array<i64: 2, 1>, scalar_prefetch = 0 : i64, scratch_operands = 0 : i64, tpu.core_type = #tpu.core_type<tc>, window_params = [{transform_indices = @transform_0, window_bounds = array<i64: 4, 8, 32>}, {transform_indices = @transform_1, window_bounds = array<i64: 4, 8, 32>}, {transform_indices = @transform_2, window_bounds = array<i64: 4, 8, 32>}, {transform_indices = @transform_3, window_bounds = array<i64: 4, 8, 32>}, {transform_indices = @transform_4, window_bounds = array<i64: 4, 8, 8>}]} {
    %c0 = arith.constant 0 : index
    %c0_0 = arith.constant 0 : index
    %c0_1 = arith.constant 0 : index
    %0 = vector.load %arg2[%c0, %c0_0, %c0_1] : memref<4x8x32xf32, #tpu.memory_space<vmem>>, vector<4x8x32xf32>
    %cst = arith.constant 0.176776692 : f32
    %1 = vector.broadcast %cst : f32 to vector<4x8x32xf32>
    %2 = arith.mulf %0, %1 : vector<4x8x32xf32>
    %c0_2 = arith.constant 0 : index
    %c0_3 = arith.constant 0 : index
    %c0_4 = arith.constant 0 : index
    %3 = vector.load %arg3[%c0_2, %c0_3, %c0_4] : memref<4x8x32xf32, #tpu.memory_space<vmem>>, vector<4x8x32xf32>
    "tpu.trace_start"() <{level = 10 : i32, message = "gqd,gkd->gqk"}> : () -> ()
    %cst_5 = arith.constant dense<0.000000e+00> : vector<4x8x8xf32>
    %4 = tpu.matmul %2, %3, %cst_5 {dimension_numbers = #tpu.dot_dimension_numbers<[2], [2], [1], [1], [0, 0, 0, 1, 1, 1], [0], [0]>} : vector<4x8x32xf32>, vector<4x8x32xf32>, vector<4x8x8xf32> -> vector<4x8x8xf32>
    "tpu.trace_stop"() : () -> ()
    %cst_6 = arith.constant dense<0xFF800000> : vector<4x8xf32>
    %5 = vector.multi_reduction <maximumf>, %4, %cst_6 [2] : vector<4x8x8xf32> to vector<4x8xf32>
    %6 = vector.shape_cast %5 : vector<4x8xf32> to vector<4x8x1xf32>
    %7 = vector.broadcast %6 : vector<4x8x1xf32> to vector<4x8x8xf32>
    %8 = arith.subf %4, %7 : vector<4x8x8xf32>
    %9 = math.exp %8 : vector<4x8x8xf32>
    %cst_7 = arith.constant dense<0.000000e+00> : vector<4x8xf32>
    %10 = vector.multi_reduction <add>, %9, %cst_7 [2] : vector<4x8x8xf32> to vector<4x8xf32>
    %11 = vector.shape_cast %10 : vector<4x8xf32> to vector<4x8x1xf32>
    %12 = tpu.reciprocal %11 : vector<4x8x1xf32> -> vector<4x8x1xf32>
    %13 = vector.broadcast %12 : vector<4x8x1xf32> to vector<4x8x8xf32>
    %14 = arith.mulf %9, %13 : vector<4x8x8xf32>
    %c0_8 = arith.constant 0 : index
    %c0_9 = arith.constant 0 : index
    %c0_10 = arith.constant 0 : index
    %15 = vector.load %arg4[%c0_8, %c0_9, %c0_10] : memref<4x8x32xf32, #tpu.memory_space<vmem>>, vector<4x8x32xf32>
    "tpu.trace_start"() <{level = 10 : i32, message = "gqk,gkd->gqd"}> : () -> ()
    %cst_11 = arith.constant dense<0.000000e+00> : vector<4x8x32xf32>
    %16 = tpu.matmul %14, %15, %cst_11 {dimension_numbers = #tpu.dot_dimension_numbers<[2], [1], [1], [2], [0, 0, 0, 1, 1, 2], [0], [0]>} : vector<4x8x8xf32>, vector<4x8x32xf32>, vector<4x8x32xf32> -> vector<4x8x32xf32>
    "tpu.trace_stop"() : () -> ()
    %c0_12 = arith.constant 0 : index
    %c0_13 = arith.constant 0 : index
    %c0_14 = arith.constant 0 : index
    %17 = vector.load %arg5[%c0_12, %c0_13, %c0_14] : memref<4x8x32xf32, #tpu.memory_space<vmem>>, vector<4x8x32xf32>
    tpu.vector_store %arg5[%c0_12, %c0_13, %c0_14], %16 {strides = array<i32>} : memref<4x8x32xf32, #tpu.memory_space<vmem>>, vector<4x8x32xf32>,
    %c0_15 = arith.constant 0 : index
    %c0_16 = arith.constant 0 : index
    %c0_17 = arith.constant 0 : index
    %18 = vector.load %arg6[%c0_15, %c0_16, %c0_17] : memref<4x8x8xf32, #tpu.memory_space<vmem>>, vector<4x8x8xf32>
    tpu.vector_store %arg6[%c0_15, %c0_16, %c0_17], %14 {strides = array<i32>} : memref<4x8x8xf32, #tpu.memory_space<vmem>>, vector<4x8x8xf32>,
    return
  }
  func.func @transform_0(%arg0: i32, %arg1: i32) -> (i32, i32, i32) {
    %c0_i32 = arith.constant 0 : i32
    %c0_i32_0 = arith.constant 0 : i32
    return %arg0, %arg1, %c0_i32 : i32, i32, i32
  }
  func.func @transform_1(%arg0: i32, %arg1: i32) -> (i32, i32, i32) {
    %c0_i32 = arith.constant 0 : i32
    %c0_i32_0 = arith.constant 0 : i32
    %c0_i32_1 = arith.constant 0 : i32
    return %arg0, %c0_i32, %c0_i32_0 : i32, i32, i32
  }
  func.func @transform_2(%arg0: i32, %arg1: i32) -> (i32, i32, i32) {
    %c0_i32 = arith.constant 0 : i32
    %c0_i32_0 = arith.constant 0 : i32
    %c0_i32_1 = arith.constant 0 : i32
    return %arg0, %c0_i32, %c0_i32_0 : i32, i32, i32
  }
  func.func @transform_3(%arg0: i32, %arg1: i32) -> (i32, i32, i32) {
    %c0_i32 = arith.constant 0 : i32
    %c0_i32_0 = arith.constant 0 : i32
    return %arg0, %arg1, %c0_i32 : i32, i32, i32
  }
  func.func @transform_4(%arg0: i32, %arg1: i32) -> (i32, i32, i32) {
    %c0_i32 = arith.constant 0 : i32
    %c0_i32_0 = arith.constant 0 : i32
    return %arg0, %arg1, %c0_i32 : i32, i32, i32
  }
}

</mosaic_0001>

<bundles_post_ra>
// kernel: tpu_custom_call.1
= control target key start
LH: loop header
LB: loop body
LE: loop exit
PB: predicated region body
PF: predicated region fallthrough
CT: control target
= control target key end

     0   :  { %s2016_s0 = inlined_call_operand.hbm [shape: f32[8,8,32], index: 0, kind: input, shape index: {}]   ;;  %s2017_s1 = inlined_call_operand.hbm [shape: f32[8,8,32], index: 1, kind: input, shape index: {}]   ;;  %s2018_s2 = inlined_call_operand.hbm [shape: f32[8,8,32], index: 2, kind: input, shape index: {}]   ;;  %s2019_s3 = inlined_call_operand.hbm [shape: f32[8,8,32], index: 3, kind: output, shape index: {0}]   ;;  %s2020_s4 = inlined_call_operand.hbm [shape: f32[8,8,8], index: 4, kind: output, shape index: {1}]  }
   0x1   :  { %2032 = sst [smem:[#allocation19_spill]] %s2017_s1 }
   0x2   :  { %10 = vsyncpa [#allocation3], 0 }
   0x3   :  { %12 = vsyncpa [#allocation3 + $0x1], 0 }
   0x4   :  { %13 = vsyncpa [#allocation6], 0 }
   0x5   :  { %15 = vsyncpa [#allocation6 + $0x1], 0 }
   0x6   :  { %16 = vsyncpa [#allocation4], 0 }
   0x7   :  { %18 = vsyncpa [#allocation4 + $0x1], 0 }
   0x8   :  { %19 = vsyncpa [#allocation10], 0 }
   0x9   :  { %21 = vsyncpa [#allocation10 + $0x1], 0  ;;  %s1638_s15 = smov 0   ;;  %s1640_s16 = smov 0  }
   0xa   :  { %s1642_s17 = smov 0   ;;  %s1644_s18 = smov 0  }
   0xb   :  { %s1646_s19 = smov 0   ;;  %s1648_s20 = smov 0  }
   0xc LB: > { %2033 = sst [smem:[#allocation15_spill]] %s1596_s19  ;;  %s1669_s21 = sadd.s32 4294967295, %s1600_s20   ;;  %s1600_s20 = sphi %s1648_s20, %s27_s20   ;;  %s1596_s19 = sphi %s1646_s19, %s2058_s19   ;;  %s1592_s18 = sphi %s1644_s18, %s2057_s18   ;;  %s1588_s17 = sphi %s1642_s17, %s2061_s17   ;;  %s1584_s16 = sphi %s1640_s16, %s2060_s16   ;;  %s1580_s15 = sphi %s1638_s15, %s2059_s15  }
   0xd   : > { %2034 = sst [smem:[#allocation16_spill]] %s1600_s20  ;;  %s1194_s22 = sadd.s32 4294967294, %s1600_s20  }
   0xe   : > { %s39_s23 = sadd.s32 1, %s1596_s19  ;;  %s48_s24 = sadd.s32 1, %s1588_s17 }
   0xf   : > { %p41_p0 = scmp.ge.s32.totalorder %s39_s23, 2  ;;  %p55_p1 = scmp.ne.s32.totalorder %s1588_s17, %s1584_s16 }
  0x10   : > { %p56_p2 = scmp.eq.s32.totalorder %s1600_s20, 0  ;;  %p61_p3 = scmp.ne.s32.totalorder %s1584_s16, %s1580_s15 }
  0x11   : > { %s2063_s23 = smov (%p41_p0, %s39_s23), 0  ;;  %p62_p5 = scmp.eq.s32.totalorder %s1669_s21, 0 }
  0x12   : > { %2035 = sst [smem:[#allocation17_spill]] %s2063_s23  ;;  %p1681_p4 = por %p56_p2, %p55_p1 }
  0x13   : > { %s43_s26 = ssub.s32 %s1596_s19, %s2063_s23  ;;  %p139_p6 = scmp.eq.s32.totalorder %s1669_s21, 1 }
  0x14   : > { %p46_p7 = scmp.eq.s32.totalorder %s43_s26, 0  ;;  %p1689_p8 = por %p62_p5, %p61_p3 }
  0x15   : > { %p1693_p9 = por %p139_p6, %p55_p1  ;;  %p145_p10 = scmp.eq.s32.totalorder %s1194_s22, 1 }
  0x16   : > { %s2037_s27 = scalar_select %p1689_p8, 1, 0 }
  0x17   : > { %s2038_s28 = scalar_select %p1693_p9, 1, 0 }
  0x18   : > { %s1698_s29 = scalar_select %p46_p7, %s1588_s17, %s48_s24  }
  0x19   : > { %p1700_p11 = por %p145_p10, %p61_p3  ;;  %p1320_p13 = scmp.lt.s32.totalorder %s1600_s20, 2 }
  0x1a   : > { %2039 = sst [smem:[#allocation18_spill]] %s1698_s29  ;;  %s2021_s5 = sand.u32 1, %s1588_s17  }
  0x1b   : > { %s2040_s30 = scalar_select %p1700_p11, 1, 0 }
  0x1c   : > { %s1709_s6 = sshll.u32 %s2021_s5, 5  ;;  %s1712_s7 = sshll.u32 %s1596_s19, 9 }
  0x1d   : > { %p1716_p0 = pnand %p1320_p13, %p1681_p4  ;;  %s215_s9 = sand.u32 1, %s1600_s20  }
  0x1e   : > { %s2042_s1 = sld [smem:[#allocation19_spill]]  ;;  %s219_s13 = scalar_lea.vmem [#allocation5], %s1709_s6 }
  0x1f   : > { %s226_s14 = sshll.u32 %s219_s13, 4  ;;  %s1732_s22 = scalar_lea.sflag [#allocation6], %s215_s9  ;;  %s1729_s14 = int_to_ptr.vmem [resolvable:$true] %s226_s14 }
  0x20   : > { %p1738_p4 = pneg %p1716_p0 }
  0x24   : > { %s1725_s12 = scalar_lea.hbm %s2042_s1, %s1712_s7  ;;  %s1397_s11 = scalar_lea.hbm %s2042_s1, 1024 }
  0x25   : > { %s1392_s24 = scalar_lea.hbm %s1725_s12, 512  ;;  %p1398_p7 = scmp.lt.u32.totalorder %s1725_s12, %s2042_s1 }
  0x26   : > { %p1393_p3 = scmp.ne.s32.totalorder %s1725_s12, %s1392_s24  ;;  %p1399_p10 = scmp.lt.u32.totalorder %s1397_s11, %s1392_s24 }
  0x27   : > { %p1401_p12 = scmp.lt.u32.totalorder %s1392_s24, %s1725_s12 }
  0x28   : > { %p1395_p5 = pnand %p1738_p4, %p1393_p3  ;;  %p1400_p13 = por %p1399_p10, %p1398_p7 }
  0x2a   : > { %p1396_p6 = pneg %p1395_p5  ;;  %p1402_p1 = por %p1401_p12, %p1400_p13 }
  0x2c   : > { %p1403_p2 = pnand %p1402_p1, %p1396_p6 }
  0x2e   : > { %1406 = shalt.err (!%p1403_p2)
}
  0x2f   : > { %s1407_s9 = scalar_lea.vmem %s1729_s14, 512  ;;  %s1602_s26 = smov [#allocation5]  }
  0x30   : > { %p1408_p3 = scmp.ne.s32.totalorder %s1729_s14, %s1407_s9  ;;  %s1412_s10 = sshll.u32 %s1602_s26, 4  ;;  %s1413_s10 = int_to_ptr.vmem [resolvable:$false] %s1412_s10 }
  0x31   : > { %s1414_s5 = scalar_lea.vmem %s1413_s10, 1024  ;;  %p1415_p9 = scmp.lt.s32.totalorder %s1729_s14, %s1413_s10 }
  0x32   : > { %p1410_p5 = pnand %p1408_p3, %p1738_p4  ;;  %p1416_p8 = scmp.lt.s32.totalorder %s1414_s5, %s1407_s9 }
  0x34   : > { %p1411_p11 = pneg %p1410_p5  ;;  %p1417_p7 = por %p1416_p8, %p1415_p9 }
  0x36   : > { %p1418_p10 = pnand %p1417_p7, %p1411_p11 }
  0x38   : > { %1421 = shalt.err (!%p1418_p10)
}
  0x39   : > { %s2024_s24 = smov 128   ;;  %s2026_s11 = smov 8  }
  0x3a   : > { %1309 = dma.hbm_to_vmem [thread:$0]  (!%p1716_p0), %s1725_s12, 512, %s1729_s14, %s1732_s22, %s2024_s24, %s2024_s24, %s2026_s11  }
  0x3b   : > { %p2044_p8 = scmp.lt.s32.totalorder %s1600_s20, 3  ;;  %p2045_p9 = scmp.ge.s32.totalorder %s1600_s20, 1 }
  0x3c   : > { %s1777_s10 = scalar_lea.hbm %s2016_s0, %s1712_s7  ;;  %s197_s5 = scalar_lea.vmem [#allocation2], %s1709_s6 }
  0x3d   : > { %p1769_p11 = pnand %p2045_p9, %p2044_p8  ;;  %s205_s1 = sshll.u32 %s197_s5, 4  ;;  %s1780_s1 = int_to_ptr.vmem [resolvable:$true] %s205_s1 }
  0x3e   : > { %s1786_s24 = scalar_lea.hbm %s2018_s2, %s1712_s7  ;;  %s2047_s11 = sand.u32 1, %s1588_s17  }
  0x3f   : > { %s2046_s13 = scalar_select %p1769_p11, 1, 0 }
  0x40   : > { %s1790_s23 = scalar_lea.sflag [#allocation3], %s2047_s11  ;;  %s1422_s19 = scalar_lea.hbm %s1777_s10, 512 }
  0x41   : > { %p1423_p12 = scmp.ne.s32.totalorder %s1777_s10, %s1422_s19  ;;  %s1427_s29 = scalar_lea.hbm %s2016_s0, 1024 }
  0x42   : > { %p1428_p6 = scmp.lt.u32.totalorder %s1777_s10, %s2016_s0  ;;  %p1429_p13 = scmp.lt.u32.totalorder %s1427_s29, %s1422_s19 }
  0x43   : > { %p1425_p1 = pnand %p1423_p12, %p1738_p4  ;;  %p1431_p5 = scmp.lt.u32.totalorder %s1422_s19, %s1777_s10 }
  0x44   : > { %p1430_p3 = por %p1429_p13, %p1428_p6 }
  0x45   : > { %p1426_p2 = pneg %p1425_p1 }
  0x46   : > { %p1432_p7 = por %p1431_p5, %p1430_p3 }
  0x48   : > { %p1433_p10 = pnand %p1432_p7, %p1426_p2 }
  0x4a   : > { %1436 = shalt.err (!%p1433_p10)
}
  0x4b   : > { %s1437_s7 = scalar_lea.vmem %s1780_s1, 512  ;;  %s1605_s11 = smov [#allocation2]  }
  0x4c   : > { %p1438_p8 = scmp.ne.s32.totalorder %s1780_s1, %s1437_s7  ;;  %s1442_s12 = sshll.u32 %s1605_s11, 4  ;;  %s1443_s12 = int_to_ptr.vmem [resolvable:$false] %s1442_s12 }
  0x4d   : > { %s1444_s20 = scalar_lea.vmem %s1443_s12, 1024  ;;  %p1445_p1 = scmp.lt.s32.totalorder %s1780_s1, %s1443_s12 }
  0x4e   : > { %p1440_p9 = pnand %p1438_p8, %p1738_p4  ;;  %p1446_p11 = scmp.lt.s32.totalorder %s1444_s20, %s1437_s7 }
  0x50   : > { %p1441_p12 = pneg %p1440_p9  ;;  %p1447_p6 = por %p1446_p11, %p1445_p1 }
  0x52   : > { %p1448_p13 = pnand %p1447_p6, %p1441_p12 }
  0x54   : > { %1451 = shalt.err (!%p1448_p13)
}
  0x55   : > { %s2048_s19 = smov 8   ;;  %s2049_s29 = smov 128  }
  0x56   : > { %1306 = dma.hbm_to_vmem [thread:$0]  (!%p1716_p0), %s1777_s10, 512, %s1780_s1, %s1790_s23, %s2049_s29, %s2049_s29, %s2048_s19  }
  0x57   : > { %s240_s14 = scalar_lea.vmem [#allocation7], %s1709_s6  ;;  %s1452_s26 = scalar_lea.hbm %s1786_s24, 512 }
  0x58   : > { %s247_s9 = sshll.u32 %s240_s14, 4  ;;  %p1453_p11 = scmp.ne.s32.totalorder %s1786_s24, %s1452_s26  ;;  %s1818_s9 = int_to_ptr.vmem [resolvable:$true] %s247_s9 }
  0x59   : > { %s1457_s11 = scalar_lea.hbm %s2018_s2, 1024  ;;  %p1458_p5 = scmp.lt.u32.totalorder %s1786_s24, %s2018_s2 }
  0x5a   : > { %p1455_p2 = pnand %p1453_p11, %p1738_p4  ;;  %p1459_p7 = scmp.lt.u32.totalorder %s1457_s11, %s1452_s26 }
  0x5b   : > { %p1461_p8 = scmp.lt.u32.totalorder %s1452_s26, %s1786_s24 }
  0x5c   : > { %p1456_p3 = pneg %p1455_p2  ;;  %p1460_p10 = por %p1459_p7, %p1458_p5 }
  0x5e   : > { %p1462_p9 = por %p1461_p8, %p1460_p10 }
  0x60   : > { %p1463_p12 = pnand %p1462_p9, %p1456_p3 }
  0x62   : > { %1466 = shalt.err (!%p1463_p12)
}
  0x63   : > { %s1467_s1 = scalar_lea.vmem %s1818_s9, 512  ;;  %s1606_s23 = smov [#allocation7]  }
  0x64   : > { %p1468_p1 = scmp.ne.s32.totalorder %s1818_s9, %s1467_s1  ;;  %s1472_s6 = sshll.u32 %s1606_s23, 4  ;;  %s1473_s6 = int_to_ptr.vmem [resolvable:$false] %s1472_s6 }
  0x65   : > { %s1474_s10 = scalar_lea.vmem %s1473_s6, 1024  ;;  %p1475_p11 = scmp.lt.s32.totalorder %s1818_s9, %s1473_s6 }
  0x66   : > { %p1470_p6 = pnand %p1468_p1, %p1738_p4  ;;  %p1476_p2 = scmp.lt.s32.totalorder %s1474_s10, %s1467_s1 }
  0x68   : > { %p1471_p13 = pneg %p1470_p6  ;;  %p1477_p5 = por %p1476_p2, %p1475_p11 }
  0x6a   : > { %p1478_p7 = pnand %p1477_p5, %p1471_p13 }
  0x6c   : > { %1481 = shalt.err (!%p1478_p7)
}
  0x6d   : > { %1312 = dma.hbm_to_vmem [thread:$0]  (!%p1716_p0), %s1786_s24, 512, %s1818_s9, %s1732_s22, %s2049_s29, %s2049_s29, %s2048_s19  }
  0x6e   : > { %p2050_p4 = scmp.ne.s32.totalorder %s2046_s13, 0 }
  0x6f   : > { %s1848_s25 = sand.u32 (!%p2050_p4), 1, %s1584_s16   ;;  %p2051_p3 = scmp.ne.s32.totalorder (!%p2050_p4), %s2037_s27, 0 }
  0x70   : > { %259 = sbr.rel (%p2050_p4) target bundleno = 889 (0x379), region = 32  ;;  %s1851_s14 = sshll.u32 (!%p2050_p4), %s1848_s25, 5 }
  0x71   : > { %s262_s8 = scalar_lea.sflag (!%p2050_p4), [#allocation3], %s1848_s25  ;;  %s265_s26 = scalar_lea.vmem (!%p2050_p4), [#allocation2], %s1851_s14 }
  0x77   : > { %1563 = dma.done.wait (%p2051_p3), %s262_s8, 512  }
  0x78   : > { %1565 = vsyncadd (%p2051_p3), %s262_s8, 4294966784  ;;  %s270_s22 = sand.u32 1, %s1669_s21   ;;  %s274_s13 = scalar_lea.vmem [#allocation5], %s1851_s14 }
  0x79   : > { %s271_s24 = scalar_lea.sflag [#allocation6], %s270_s22 }
  0x7a   : > { %1567 = dma.done.wait (%p2051_p3), %s271_s24, 1024  }
  0x7b   : > { %1569 = vsyncadd (%p2051_p3), %s271_s24, 4294966272  ;;  %v1607_v0 = vmov 0.0   ;;  %vm1608_vm0 = vmmov 0   ;;  %vm340_vm1 = vcmask 261120   ;;  %v336_v1 = vld [vmem:[%s274_s13] sm:$0xff]  ;;  %v337_v3 = vld [vmem:[%s274_s13 + $0x8] sm:$0xff] }
  0x7c   : > { %1253 = vmatprep.subr.mxu0 %v1607_v0  ;;  %1255 = vmatprep.mubr.msk.f32.mxu0 %vm1608_vm0, %v1607_v0  ;;  %v328_v2 = vld [vmem:[%s265_s26] sm:$0xff]  ;;  %v329_v5 = vld [vmem:[%s265_s26 + $0x8] sm:$0xff]  ;;  %v330_v6 = vld [vmem:[%s265_s26 + $0x10] sm:$0xff]  ;;  %vm645_vm2 = vcmask 64512   ;;  %s283_s21 = scalar_lea.vmem [#allocation7], %s1851_s14  ;;  %s322_s27 = scalar_lea.vmem [#allocation9], %s1851_s14 }
  0x7d   : > { %1258 = vmatprep.subr.mxu1 %v1607_v0  ;;  %1260 = vmatprep.mubr.msk.f32.mxu1 %vm1608_vm0, %v1607_v0  ;;  %v332_v4 = vmul.f32 0.17677669, %v328_v2  ;;  %v338_v7 = vld [vmem:[%s274_s13 + $0x10] sm:$0xff]  ;;  %v333_v8 = vmul.f32 0.17677669, %v329_v5  ;;  %v331_v9 = vld [vmem:[%s265_s26 + $0x18] sm:$0xff] }
  0x7e   : > { %1254 = vmatpush3.xpose.msk.msra.mxu0 %vm340_vm1, %v336_v1  ;;  %1259 = vmatpush3.xpose.msk.msra.mxu1 %vm340_vm1, %v337_v3  ;;  %v339_v10 = vld [vmem:[%s274_s13 + $0x18] sm:$0xff]  ;;  %v334_v11 = vmul.f32 0.17677669, %v330_v6  ;;  %v335_v12 = vmul.f32 0.17677669, %v331_v9  ;;  %v690_v45 = vld [vmem:[%s283_s21] sm:$0xff] }
  0x7f   : > { %1263 = vmatprep.subr.mxu0 %v1607_v0  ;;  %1268 = vmatprep.subr.mxu1 %v1607_v0  ;;  %v691_v46 = vld [vmem:[%s283_s21 + $0x8] sm:$0xff]  ;;  %v692_v53 = vld [vmem:[%s283_s21 + $0x10] sm:$0xff]  ;;  %v693_v57 = vld [vmem:[%s283_s21 + $0x18] sm:$0xff]  ;;  %s1235_s19 = sshll.u32 %s1592_s18, 9  ;;  %s1031_s7 = sshll.u32 %s322_s27, 4  ;;  %s1923_s7 = int_to_ptr.vmem [resolvable:$true] %s1031_s7 }
  0x80   : > { %s1921_s5 = scalar_lea.hbm %s2020_s4, %s1235_s19  ;;  %s1000_s11 = scalar_lea.sflag [#allocation10], %s1848_s25 }
  0x81   : > { %1256 = vmatmul.mubr.msk.f32.vlgmr.msra.gmra.mrb[0].mxu0 %vm340_vm1, %v332_v4  ;;  %1261 = vmatmul.mubr.msk.f32.vlgmr.msra.gmra.mrb[0].mxu1 %vm340_vm1, %v333_v8  ;;  %s1482_s12 = scalar_lea.vmem %s1923_s7, 512  ;;  %p2052_p10 = scmp.ne.s32.totalorder %s2038_s28, 0 }
  0x82   : > { %1264 = vmatpush3.xpose.msk.msra.mxu0 %vm340_vm1, %v338_v7  ;;  %1265 = vmatprep.mubr.msk.f32.mxu0 %vm1608_vm0, %v1607_v0  ;;  %p1483_p0 = scmp.ne.s32.totalorder %s1923_s7, %s1482_s12  ;;  %s1609_s20 = smov [#allocation9]  }
  0x83   : > { %1269 = vmatpush3.xpose.msk.msra.mxu1 %vm340_vm1, %v339_v10  ;;  %1270 = vmatprep.mubr.msk.f32.mxu1 %vm1608_vm0, %v1607_v0  ;;  %s1486_s1 = sshll.u32 %s1609_s20, 4  ;;  %s1487_s1 = int_to_ptr.vmem [resolvable:$false] %s1486_s1 }
  0x84   : > { %1273 = vmatprep.subr.mxu0 %v1607_v0  ;;  %1278 = vmatprep.subr.mxu1 %v1607_v0  ;;  %p1484_p8 = pnand %p1483_p0, %p2052_p10  ;;  %s1488_s23 = scalar_lea.vmem %s1487_s1, 1024 }
  0x85   : > { %1266 = vmatmul.mubr.msk.f32.vlgmr.msra.gmra.mrb[2].mxu0 %vm340_vm1, %v334_v11  ;;  %p1489_p12 = scmp.lt.s32.totalorder %s1923_s7, %s1487_s1  ;;  %p1490_p1 = scmp.lt.s32.totalorder %s1488_s23, %s1482_s12 }
  0x86   : > { %1271 = vmatmul.mubr.msk.f32.vlgmr.msra.gmra.mrb[2].mxu1 %vm340_vm1, %v335_v12  ;;  %1275 = vmatprep.mubr.msk.f32.mxu0 %vm1608_vm0, %v1607_v0  ;;  %p1485_p9 = pneg %p1484_p8 }
  0x87   : > { %1280 = vmatprep.mubr.msk.f32.mxu1 %vm1608_vm0, %v1607_v0  ;;  %1274 = vmatpush3.msra.mxu0 %v690_v45  ;;  %p1491_p6 = por %p1490_p1, %p1489_p12 }
  0x88   : > { %1283 = vmatprep.subr.mxu0 %v1607_v0  ;;  %1279 = vmatpush3.msra.mxu1 %v691_v46 }
  0x89   : > { %1288 = vmatprep.subr.mxu1 %v1607_v0  ;;  %p1492_p13 = pnand %p1491_p6, %p1485_p9 }
 0x154   : > { %v413_v13 = vpop.f32.mrb[0].mxu0  ;;  %v489_v14 = vpop.f32.mrb[0].mxu1 }
 0x155   : > { %v1257_v15 = vpop.f32.mrb[1].mxu0  ;;  %v646_v16 = vsel %vm645_vm2, %v413_v13, -inf  ;;  %v1262_v17 = vpop.f32.mrb[1].mxu1  ;;  %v649_v18 = vsel %vm645_vm2, %v489_v14, -inf }
 0x156   : > { %647 = vmax.xlane.f32.xlu0 %v646_v16 }
 0x158   : > { %v565_v19 = vpop.f32.mrb[2].mxu0 }
 0x159   : > { %v1267_v20 = vpop.f32.mrb[3].mxu0  ;;  %v652_v21 = vsel %vm645_vm2, %v565_v19, -inf  ;;  %v641_v22 = vpop.f32.mrb[2].mxu1 }
 0x15a   : > { %650 = vmax.xlane.f32.xlu0 %v649_v18  ;;  %653 = vmax.xlane.f32.xlu1 %v652_v21  ;;  %v1272_v23 = vpop.f32.mrb[3].mxu1  ;;  %v655_v24 = vsel %vm645_vm2, %v641_v22, -inf }
 0x15e   : > { %656 = vmax.xlane.f32.xlu1 %v655_v24 }
 0x1e3   : > { %v648_v25 = vpop.xlane.xlu0 %647 }
 0x1e4   : > { %v658_v26 = vsub.f32 %v413_v13, %v648_v25 }
 0x1e6   : > { %v662_v27 = vmul.f32 1.442695, %v658_v26 }
 0x1e7   : > { %v651_v28 = vpop.xlane.xlu0 %650  ;;  %v654_v29 = vpop.xlane.xlu1 %653 }
 0x1e8   : > { %1376 = vpow2.f32 %v662_v27  ;;  %v659_v30 = vsub.f32 %v489_v14, %v651_v28  ;;  %v660_v31 = vsub.f32 %v565_v19, %v654_v29 }
 0x1ea   : > { %v664_v32 = vmul.f32 1.442695, %v659_v30  ;;  %v666_v33 = vmul.f32 1.442695, %v660_v31 }
 0x1eb   : > { %v657_v34 = vpop.xlane.xlu1 %656 }
 0x1ec   : > { %1378 = vpow2.f32 %v664_v32  ;;  %v661_v35 = vsub.f32 %v641_v22, %v657_v34 }
 0x1ed   : > { %1380 = vpow2.f32 %v666_v33 }
 0x1ee   : > { %v668_v36 = vmul.f32 1.442695, %v661_v35 }
 0x1f0   : > { %1382 = vpow2.f32 %v668_v36 }
 0x1f2   : > { %v1377_v37 = vpop.eup %1376 }
 0x1f3   : > { %v670_v38 = vsel %vm645_vm2, %v1377_v37, 0.0 }
 0x1f4   : > { %671 = vadd.xlane.f32.xlu0 %v670_v38 }
 0x1f6   : > { %v1379_v39 = vpop.eup %1378 }
 0x1f7   : > { %v1381_v40 = vpop.eup %1380  ;;  %v673_v41 = vsel %vm645_vm2, %v1379_v39, 0.0 }
 0x1f8   : > { %674 = vadd.xlane.f32.xlu1 %v673_v41  ;;  %v676_v42 = vsel %vm645_vm2, %v1381_v40, 0.0 }
 0x1f9   : > { %677 = vadd.xlane.f32.xlu0 %v676_v42 }
 0x1fa   : > { %v1383_v43 = vpop.eup %1382 }
 0x1fb   : > { %v679_v44 = vsel %vm645_vm2, %v1383_v43, 0.0 }
 0x1fc   : > { %680 = vadd.xlane.f32.xlu1 %v679_v44 }
 0x281   : > { %v672_v47 = vpop.xlane.xlu0 %671 }
 0x282   : > { %1384 = vrcp.f32 %v672_v47 }
 0x285   : > { %v675_v48 = vpop.xlane.xlu1 %674 }
 0x286   : > { %v678_v49 = vpop.xlane.xlu0 %677  ;;  %1386 = vrcp.f32 %v675_v48 }
 0x287   : > { %1388 = vrcp.f32 %v678_v49 }
 0x289   : > { %v681_v50 = vpop.xlane.xlu1 %680 }
 0x28a   : > { %1390 = vrcp.f32 %v681_v50 }
 0x28c   : > { %v1385_v51 = vpop.eup %1384 }
 0x28d   : > { %v686_v52 = vmul.f32 %v1385_v51, %v1377_v37 }
 0x28f   : > { %990 = vst.msk [vmem:[%s322_s27] sm:$0xff] %vm645_vm2, %v686_v52  ;;  %1276 = vmatmul.mubr.msk.f32.vlgmr.msra.gmra.mrb[4].mxu0 %vm645_vm2, %v686_v52 }
 0x290   : > { %v1387_v54 = vpop.eup %1386  ;;  %1284 = vmatpush3.msra.mxu0 %v692_v53  ;;  %1285 = vmatprep.mubr.msk.f32.mxu0 %vm1608_vm0, %v1607_v0 }
 0x291   : > { %v1389_v55 = vpop.eup %1388  ;;  %v687_v56 = vmul.f32 %v1387_v54, %v1379_v39 }
 0x292   : > { %v688_v58 = vmul.f32 %v1389_v55, %v1381_v40 }
 0x293   : > { %991 = vst.msk [vmem:[%s322_s27 + $0x8] sm:$0xff] %vm645_vm2, %v687_v56  ;;  %1281 = vmatmul.mubr.msk.f32.vlgmr.msra.gmra.mrb[4].mxu1 %vm645_vm2, %v687_v56 }
 0x294   : > { %v1391_v59 = vpop.eup %1390  ;;  %992 = vst.msk [vmem:[%s322_s27 + $0x10] sm:$0xff] %vm645_vm2, %v688_v58  ;;  %1286 = vmatmul.mubr.msk.f32.vlgmr.msra.gmra.mrb[6].mxu0 %vm645_vm2, %v688_v58  ;;  %1289 = vmatpush3.msra.mxu1 %v693_v57 }
 0x295   : > { %v689_v60 = vmul.f32 %v1391_v59, %v1383_v43  ;;  %1290 = vmatprep.mubr.msk.f32.mxu1 %vm1608_vm0, %v1607_v0 }
 0x297   : > { %993 = vst.msk [vmem:[%s322_s27 + $0x18] sm:$0xff] %vm645_vm2, %v689_v60  ;;  %1291 = vmatmul.mubr.msk.f32.vlgmr.msra.gmra.mrb[6].mxu1 %vm645_vm2, %v689_v60 }
 0x298   : > { %1495 = shalt.err (!%p1492_p13)
}
 0x299   : > { %s1496_s6 = scalar_lea.hbm %s1921_s5, 512  ;;  %s1500_s26 = scalar_lea.hbm %s2020_s4, 1024 }
 0x29a   : > { %p1497_p11 = scmp.ne.s32.totalorder %s1921_s5, %s1496_s6  ;;  %p1501_p7 = scmp.lt.u32.totalorder %s1921_s5, %s2020_s4 }
 0x29b   : > { %p1502_p4 = scmp.lt.u32.totalorder %s1500_s26, %s1496_s6  ;;  %p1504_p0 = scmp.lt.u32.totalorder %s1496_s6, %s1921_s5 }
 0x29c   : > { %p1498_p2 = pnand %p1497_p11, %p2052_p10 }
 0x29d   : > { %p1503_p3 = por %p1502_p4, %p1501_p7 }
 0x29e   : > { %p1499_p5 = pneg %p1498_p2 }
 0x29f   : > { %p1505_p8 = por %p1504_p0, %p1503_p3 }
 0x2a1   : > { %p1506_p9 = pnand %p1505_p8, %p1499_p5 }
 0x2a3   : > { %1509 = shalt.err (!%p1506_p9)
}
 0x2a4   : > { %s1610_s13 = smov 128   ;;  %s1611_s21 = smov 8  }
 0x2a5   : > { %1300 = dma.vmem_to_hbm [thread:$0]  (%p2052_p10), %s1923_s7, 512, %s1921_s5, %s1000_s11, %s1610_s13, %s1610_s13, %s1611_s21  }
 0x2a6   : > { %s315_s27 = scalar_lea.vmem [#allocation8], %s1851_s14  ;;  %s1963_s5 = scalar_lea.hbm %s2019_s3, %s1235_s19 }
 0x2a7   : > { %s1014_s29 = sshll.u32 %s315_s27, 4  ;;  %s995_s7 = scalar_lea.sflag [#allocation4], %s1848_s25  ;;  %s1955_s29 = int_to_ptr.vmem [resolvable:$true] %s1014_s29 }
 0x2a8   : > { %s1510_s11 = scalar_lea.vmem %s1955_s29, 512  ;;  %s1612_s12 = smov [#allocation8]  }
 0x2a9   : > { %p1511_p12 = scmp.ne.s32.totalorder %s1955_s29, %s1510_s11  ;;  %s1514_s20 = sshll.u32 %s1612_s12, 4  ;;  %s1515_s20 = int_to_ptr.vmem [resolvable:$false] %s1514_s20 }
 0x2aa   : > { %s1516_s1 = scalar_lea.vmem %s1515_s20, 1024  ;;  %p1517_p13 = scmp.lt.s32.totalorder %s1955_s29, %s1515_s20 }
 0x2ab   : > { %p1512_p1 = pnand %p1511_p12, %p2052_p10  ;;  %p1518_p11 = scmp.lt.s32.totalorder %s1516_s1, %s1510_s11 }
 0x2ad   : > { %p1513_p6 = pneg %p1512_p1  ;;  %p1519_p2 = por %p1518_p11, %p1517_p13 }
 0x2af   : > { %p1520_p5 = pnand %p1519_p2, %p1513_p6 }
 0x362   : > { %v763_v61 = vpop.f32.mrb[4].mxu0 }
 0x363   : > { %986 = vst.msk [vmem:[%s315_s27] sm:$0xff] %vm340_vm1, %v763_v61  ;;  %v1277_v62 = vpop.f32.mrb[5].mxu0 }
 0x366   : > { %v836_v63 = vpop.f32.mrb[4].mxu1 }
 0x367   : > { %987 = vst.msk [vmem:[%s315_s27 + $0x8] sm:$0xff] %vm340_vm1, %v836_v63  ;;  %v909_v0 = vpop.f32.mrb[6].mxu0  ;;  %v1282_v1 = vpop.f32.mrb[5].mxu1 }
 0x368   : > { %988 = vst.msk [vmem:[%s315_s27 + $0x10] sm:$0xff] %vm340_vm1, %v909_v0  ;;  %v1287_v2 = vpop.f32.mrb[7].mxu0 }
 0x36a   : > { %v982_v3 = vpop.f32.mrb[6].mxu1 }
 0x36b   : > { %989 = vst.msk [vmem:[%s315_s27 + $0x18] sm:$0xff] %vm340_vm1, %v982_v3  ;;  %v1292_v4 = vpop.f32.mrb[7].mxu1 }
 0x36c   : > { %1523 = shalt.err (!%p1520_p5)
}
 0x36d   : > { %s1524_s18 = scalar_lea.hbm %s1963_s5, 512  ;;  %s1528_s6 = scalar_lea.hbm %s2019_s3, 1024 }
 0x36e   : > { %p1525_p7 = scmp.ne.s32.totalorder %s1963_s5, %s1524_s18  ;;  %p1529_p0 = scmp.lt.u32.totalorder %s1963_s5, %s2019_s3 }
 0x36f   : > { %p1530_p8 = scmp.lt.u32.totalorder %s1528_s6, %s1524_s18  ;;  %p1532_p12 = scmp.lt.u32.totalorder %s1524_s18, %s1963_s5 }
 0x370   : > { %p1526_p4 = pnand %p1525_p7, %p2052_p10 }
 0x371   : > { %p1531_p9 = por %p1530_p8, %p1529_p0 }
 0x372   : > { %p1527_p3 = pneg %p1526_p4 }
 0x373   : > { %p1533_p1 = por %p1532_p12, %p1531_p9 }
 0x375   : > { %p1534_p6 = pnand %p1533_p1, %p1527_p3 }
 0x377   : > { %1537 = shalt.err (!%p1534_p6)
}
 0x378   : > { %1299 = dma.vmem_to_hbm [thread:$0]  (%p2052_p10), %s1955_s29, 512, %s1963_s5, %s995_s7, %s1610_s13, %s1610_s13, %s1611_s21  }
 0x379 PF: > { %s2053_s26 = sld [smem:[#allocation16_spill]]  ;;  %s1046_s22 = sand.u32 1, %s1580_s15  }
 0x37a   : > { %p2054_p13 = scmp.ne.s32.totalorder %s2040_s30, 0  ;;  %s1047_s24 = scalar_lea.sflag [#allocation4], %s1046_s22 }
 0x37f   : > { %p2055_p11 = scmp.ge.s32.totalorder %s2053_s26, 2 }
 0x381   : > { %p1314_p2 = pnand %p2055_p11, %p2054_p13 }
 0x383   : > { %1571 = dma.done.wait (!%p1314_p2), %s1047_s24, 512  }
 0x384   : > { %1573 = vsyncadd (!%p1314_p2), %s1047_s24, 4294966784  ;;  %s1056_s28 = scalar_lea.sflag [#allocation10], %s1046_s22 }
 0x385   : > { %1575 = dma.done.wait (!%p1314_p2), %s1056_s28, 512  }
 0x386   : > { %1577 = vsyncadd (!%p1314_p2), %s1056_s28, 4294966784  ;;  %s27_s20 = sadd.s32 1, %s2053_s26   ;;  %s2056_s25 = sld [smem:[#allocation18_spill]] }
 0x387   : > { %p24_p5 = scmp.ge.s32.totalorder %s27_s20, 4   ;;  %s2057_s18 = sld [smem:[#allocation15_spill]] }
 0x388   : > { %s2058_s19 = sld [smem:[#allocation17_spill]]  ;;  %s2059_s15 = smov %s1584_s16 }
 0x389   : > { %s2060_s16 = smov %s1588_s17  ;;  %26 = sbr.rel (!%p24_p5) target bundleno = 12 (0xc), region = 118 }
 0x38c   : > { %s2061_s17 = smov %s2056_s25 }
 0x390   :  { %1061 = vsyncpa [#allocation3], 1 }
 0x391   :  { %1063 = vsyncpa [#allocation3 + $0x1], 1 }
 0x392   :  { %1064 = vsyncpa [#allocation6], 1 }
 0x393   :  { %1066 = vsyncpa [#allocation6 + $0x1], 1 }
 0x394   :  { %1067 = vsyncpa [#allocation4], 1 }
 0x395   :  { %1069 = vsyncpa [#allocation4 + $0x1], 1 }
 0x396   :  { %1070 = vsyncpa [#allocation10], 1 }
 0x397   :  { %1072 = vsyncpa [#allocation10 + $0x1], 1 }

</bundles_post_ra>
